<compile_context>
chip_gen: v7x
topology: tpu7x:2x2x1
jax: 0.10.0
libtpu: 0.0.40
codegen_flags: <defaults>
</compile_context>

<pallas_src>
import functools

import jax
import jax.numpy as jnp
import numpy as np
from jax.experimental import pallas as pl
from jax.experimental.pallas import tpu as pltpu


# ----------------------------------------------------------------------------
# per-chunk loss (feature-major)
# ----------------------------------------------------------------------------
def _chunk_loss(p_nat, t_nat, row_base, lane_iota, *, n_cells, S,
                coeff_coord, coeff_noobj):
    """Per-cell loss of one chunk of cells.

    p_nat / t_nat : (chunk, 30) natural-layout values (input dtype).
    row_base      : scalar global row index of the chunk's first cell.
    lane_iota     : (1, chunk) int32 iota (hoisted by the caller).
    Returns a (1, chunk) f32 per-cell loss with out-of-range rows zeroed.
    """
    inv_S = 1.0 / float(S)
    eps = 1e-12

    # Transpose in the input dtype (bf16 packs 2x on the XLU), upcast after.
    pf = jnp.transpose(p_nat).astype(jnp.float32)   # (30, chunk)
    tf = jnp.transpose(t_nat).astype(jnp.float32)

    obj_b = tf[4:5, :] > 0.0                        # (1, chunk) bool
    noobj = (tf[4:5, :] == 0.0).astype(jnp.float32)

    def corners(b):                                 # b: (4, chunk) = x,y,w,h
        cx = b[0:1, :] * inv_S
        cy = b[1:2, :] * inv_S
        hw = 0.5 * b[2:3, :]
        hh = 0.5 * b[3:4, :]
        return cx - hw, cy - hh, cx + hw, cy + hh

    def area(c):
        x1, y1, x2, y2 = c
        return (x2 - x1) * (y2 - y1)

    p0c, p1c = corners(pf[0:4, :]), corners(pf[5:9, :])
    t0c, t1c = corners(tf[0:4, :]), corners(tf[5:9, :])
    ap0, ap1, at0, at1 = area(p0c), area(p1c), area(t0c), area(t1c)

    def inter_union(a, b, aa, ba):
        ax1, ay1, ax2, ay2 = a
        bx1, by1, bx2, by2 = b
        iw = jnp.maximum(jnp.minimum(ax2, bx2) - jnp.maximum(ax1, bx1), 0.0)
        ih = jnp.maximum(jnp.minimum(ay2, by2) - jnp.maximum(ay1, by1), 0.0)
        inter = iw * ih
        union = aa + ba - inter + eps
        return inter, union

    i00, u00 = inter_union(p0c, t0c, ap0, at0)      # pred0 vs targ0
    i10, u10 = inter_union(p1c, t0c, ap1, at0)      # pred1 vs targ0
    i01, u01 = inter_union(p0c, t1c, ap0, at1)      # pred0 vs targ1
    i11, u11 = inter_union(p1c, t1c, ap1, at1)      # pred1 vs targ1

    # Responsible-box selection via exact cross products (immune to the
    # approximate reciprocal); strict '>' => pred box 0 wins ties, matching
    # torch.max(dim=0) / np.argmax.
    sel0_is1 = (i10 * u00) > (i00 * u10)
    sel1_is1 = (i11 * u01) > (i01 * u11)

    # Two reciprocals instead of four: pick num/den first, divide once each.
    val0 = jnp.where(sel0_is1, i10, i00) * pl.reciprocal(
        jnp.where(sel0_is1, u10, u00), approx=True)
    val1 = jnp.where(sel1_is1, i11, i01) * pl.reciprocal(
        jnp.where(sel1_is1, u11, u01), approx=True)

    not0 = jnp.logical_not(sel0_is1)
    not1 = jnp.logical_not(sel1_is1)
    resp0 = jnp.logical_or(not0, not1).astype(jnp.float32)
    resp1 = jnp.logical_or(sel0_is1, sel1_is1).astype(jnp.float32)

    # Assigned confidence targets: the reference writes target-box-0's match
    # first, then target-box-1's -> last write wins on duplicate pred slots.
    conf0 = jnp.where(not1, val1, jnp.where(not0, val0, 0.0))
    conf1 = jnp.where(sel1_is1, val1, jnp.where(sel0_is1, val0, 0.0))

    def sq(z):
        return z * z

    # (sqrt(pw)-sqrt(tw))^2 = pw + tw - 2*sqrt(pw*tw): 4 sqrts/cell not 8.
    # TODO(synk): assumes non-negative w/h (valid YOLO encodings); a negative
    # pred w/h paired with a zero target stays finite here while the torch
    # reference would produce NaN.
    loc0 = (sq(pf[0:1] - tf[0:1]) + sq(pf[1:2] - tf[1:2])
            + pf[2:3] + tf[2:3] - 2.0 * jnp.sqrt(pf[2:3] * tf[2:3])
            + pf[3:4] + tf[3:4] - 2.0 * jnp.sqrt(pf[3:4] * tf[3:4]))
    loc1 = (sq(pf[5:6] - tf[5:6]) + sq(pf[6:7] - tf[6:7])
            + pf[7:8] + tf[7:8] - 2.0 * jnp.sqrt(pf[7:8] * tf[7:8])
            + pf[8:9] + tf[8:9] - 2.0 * jnp.sqrt(pf[8:9] * tf[8:9]))

    conf_term = resp0 * sq(pf[4:5] - conf0) + resp1 * sq(pf[9:10] - conf1)
    loc_term = resp0 * loc0 + resp1 * loc1
    noobj_term = noobj * (sq(pf[4:5]) + sq(pf[9:10]))

    # Class loss, feature-major: (20, chunk) -> (1, chunk).
    dcls = pf[10:, :] - tf[10:, :]
    cls_pc = jnp.sum(dcls * dcls, axis=0, keepdims=True)

    # where() (not multiply) so box-math NaNs on non-object cells cannot leak.
    obj_part = coeff_coord * loc_term + conf_term + cls_pc
    per_cell = jnp.where(obj_b, obj_part, 0.0) + coeff_noobj * noobj_term

    # Zero rows past the real array (ragged last block / phantom tiles of the
    # dual-core split).  select() also kills NaN/Inf from garbage pad rows.
    valid = (row_base + lane_iota) < n_cells
    return jnp.where(valid, per_cell, 0.0)


# ----------------------------------------------------------------------------
# Pallas kernel: one cell tile per grid step, chunked over lanes inside
# ----------------------------------------------------------------------------
def _yolo_loss_kernel(pred_ref, targ_ref, out_ref, *, S, coeff_coord,
                      coeff_noobj, batch_size, n_cells, cell_tile, chunk,
                      tiles_per_core):
    inv_bs = 1.0 / float(batch_size)

    # Logical tile id (core-split aware) and its first global row.
    g = pl.program_id(0) * tiles_per_core + pl.program_id(1)
    tile_row0 = g * cell_tile

    loss_fn = functools.partial(_chunk_loss, n_cells=n_cells, S=S,
                                coeff_coord=coeff_coord,
                                coeff_noobj=coeff_noobj)

    n_full = cell_tile // chunk
    rem = cell_tile - n_full * chunk

    # Per-core resident scalar accumulator (output block index fixed along
    # the "arbitrary" tile axis).
    @pl.when(pl.program_id(1) == 0)
    def _init():
        out_ref[...] = jnp.zeros(out_ref.shape, out_ref.dtype)

    lane_full = jax.lax.broadcasted_iota(jnp.int32, (1, chunk), 1)

    if n_full >= 2:
        def body(ci, acc):
            start = pl.multiple_of(ci * chunk, 8)
            per_cell = loss_fn(pred_ref[pl.ds(start, chunk), :],
                               targ_ref[pl.ds(start, chunk), :],
                               tile_row0 + start, lane_full)
            return acc + per_cell
        acc = jax.lax.fori_loop(0, n_full, body,
                                jnp.zeros((1, chunk), jnp.float32))
        tile_sum = jnp.sum(acc)
    else:   # n_full == 1 (chunk == cell_tile or single leading chunk)
        tile_sum = jnp.sum(loss_fn(pred_ref[0:chunk, :], targ_ref[0:chunk, :],
                                   tile_row0, lane_full))

    if rem > 0:
        s0 = n_full * chunk
        lane_rem = jax.lax.broadcasted_iota(jnp.int32, (1, rem), 1)
        tile_sum = tile_sum + jnp.sum(
            loss_fn(pred_ref[s0:s0 + rem, :], targ_ref[s0:s0 + rem, :],
                    tile_row0 + s0, lane_rem))

    out_ref[...] += jnp.reshape(tile_sum * inv_bs, out_ref.shape)


# ----------------------------------------------------------------------------
# Wrapper (free reshape only; no padding, no transpose, no extra HBM pass)
# ----------------------------------------------------------------------------
def yolo_loss_pallas(pred, target, *, S=7, B=2, C=20, coeff_coord=5.0,
                     coeff_noobj=0.5, max_cell_tile=8192, chunk_cells=512):
    assert B == 2, "kernel is specialized for B=2 (module default)"
    n_feat = 5 * B + C
    assert pred.shape == target.shape
    assert pred.shape[-1] == n_feat
    batch_size = pred.shape[0]

    p2 = pred.reshape(-1, n_feat)     # free reshape: natural cell-major layout
    t2 = target.reshape(-1, n_feat)
    n_cells = p2.shape[0]

    if n_cells <= max_cell_tile:
        # Single-block fast path: block shape == full array shape, so the
        # (8,128) divisibility rule does not apply and no padding is needed.
        cell_tile, num_tiles, cores = n_cells, 1, 1
    else:
        assert max_cell_tile % 8 == 0
        cell_tile = max_cell_tile
        num_tiles = pl.cdiv(n_cells, cell_tile)
        # Dual-TensorCore reduction split (v7x); plain extra loop level on
        # single-TC v5e/v6e.
        cores = 2 if num_tiles >= 2 else 1

    tiles_per_core = pl.cdiv(num_tiles, cores)
    chunk = min(chunk_cells, cell_tile)

    kernel = functools.partial(
        _yolo_loss_kernel, S=S, coeff_coord=coeff_coord,
        coeff_noobj=coeff_noobj, batch_size=batch_size, n_cells=n_cells,
        cell_tile=cell_tile, chunk=chunk, tiles_per_core=tiles_per_core)

    def in_map(c, i):
        # Clamp so a phantom step (odd tile count split across 2 cores) still
        # issues an in-bounds DMA; its rows are zeroed in-kernel by the global
        # row-index mask, so it contributes exactly 0.
        return (jnp.minimum(c * tiles_per_core + i, num_tiles - 1), 0)

    # Lane-padded VMEM accounting: a (T, 30) block occupies T*128*itemsize
    # bytes.  2 inputs x 2 pipeline buffers + headroom for feature-major
    # temporaries; capped well under v7x's 64 MiB physical VMEM.
    blk_bytes = cell_tile * 128 * (p2.dtype.itemsize + t2.dtype.itemsize)
    vmem_limit = int(min(48 * 2**20, max(32 * 2**20, 2 * blk_bytes + 8 * 2**20)))

    out = pl.pallas_call(
        kernel,
        out_shape=jax.ShapeDtypeStruct((cores, 1, 1), jnp.float32),
        grid=(cores, tiles_per_core),
        in_specs=[
            pl.BlockSpec((cell_tile, n_feat), in_map),
            pl.BlockSpec((cell_tile, n_feat), in_map),
        ],
        out_specs=pl.BlockSpec((1, 1, 1), lambda c, i: (c, 0, 0)),
        compiler_params=pltpu.CompilerParams(
            dimension_semantics=("parallel", "arbitrary"),
            vmem_limit_bytes=vmem_limit),
    )(p2, t2)
    return jnp.sum(out)


# ----------------------------------------------------------------------------
# NumPy reference replicating the PyTorch forward literally (verification)
# ----------------------------------------------------------------------------
def _iou_np(b1, b2, S):
    b1 = np.asarray(b1, np.float64)
    b2 = np.asarray(b2, np.float64)
    b1_lt = b1[:, :2] / float(S) - 0.5 * b1[:, 2:]
    b1_rb = b1[:, :2] / float(S) + 0.5 * b1[:, 2:]
    b2_lt = b2[:, :2] / float(S) - 0.5 * b2[:, 2:]
    b2_rb = b2[:, :2] / float(S) + 0.5 * b2[:, 2:]
    box1 = np.concatenate([b1_lt, b1_rb], axis=1)
    box2 = np.concatenate([b2_lt, b2_rb], axis=1)
    lt = np.maximum(box1[:, None, :2], box2[None, :, :2])
    rb = np.minimum(box1[:, None, 2:], box2[None, :, 2:])
    wh = np.clip(rb - lt, 0.0, None)
    inter = wh[:, :, 0] * wh[:, :, 1]
    a1 = (box1[:, 2] - box1[:, 0]) * (box1[:, 3] - box1[:, 1])
    a2 = (box2[:, 2] - box2[:, 0]) * (box2[:, 3] - box2[:, 1])
    union = a1[:, None] + a2[None, :] - inter
    return inter / union


def yolo_loss_ref(pred, target, *, S=7, B=2, C=20,
                  coeff_coord=5.0, coeff_noobj=0.5):
    pred = np.asarray(pred, np.float64)
    target = np.asarray(target, np.float64)
    N = 5 * B + C
    bs = pred.shape[0]
    p = pred.reshape(bs, -1, N)
    t = target.reshape(bs, -1, N)
    yeobj = t[:, :, 4] > 0
    noobj = t[:, :, 4] == 0

    yeobj_pred = p[yeobj]
    yeobj_targ = t[yeobj]
    bbox_pred = yeobj_pred[:, :5 * B].reshape(-1, 5).copy()
    bbox_targ = yeobj_targ[:, :5 * B].reshape(-1, 5).copy()
    class_pred = yeobj_pred[:, 5 * B:]
    class_targ = yeobj_targ[:, 5 * B:]

    noobj_pred = p[noobj]
    noobj_conf = noobj_pred[:, [4, 9]]
    loss_noobj = np.sum(noobj_conf ** 2)

    resp = np.zeros(bbox_targ.shape[0], dtype=bool)
    for i in range(0, bbox_targ.shape[0], B):
        iou = _iou_np(bbox_pred[i:i + B, :4], bbox_targ[i:i + B, :4], S)
        max_iou = iou.max(0)
        max_idx = iou.argmax(0)
        resp[i + max_idx] = True
        bbox_targ[i + max_idx, 4] = max_iou   # last write wins on duplicates

    bp = bbox_pred[resp]
    bt = bbox_targ[resp]
    loss_loc = (np.sum((bp[:, :2] - bt[:, :2]) ** 2) +
                np.sum((np.sqrt(bp[:, 2:4]) - np.sqrt(bt[:, 2:4])) ** 2))
    loss_yeobj = np.sum((bp[:, 4] - bt[:, 4]) ** 2)
    loss_cls = np.sum((class_pred - class_targ) ** 2)
    total = (coeff_coord * loss_loc + loss_yeobj +
             coeff_noobj * loss_noobj + loss_cls) / float(bs)
    return total


# ----------------------------------------------------------------------------
if __name__ == "__main__":
    S, B, C = 7, 2, 20
    N = 5 * B + C

    key = jax.random.PRNGKey(0)
    k1, k2, k3, k4, k5, k6 = jax.random.split(key, 6)

    def make_inputs(kp, kt, ko, batch):
        prd = jax.random.uniform(kp, (batch, S, S, N), minval=0.05,
                                 maxval=0.95, dtype=jnp.float32)
        tgt = jax.random.uniform(kt, (batch, S, S, N), minval=0.1,
                                 maxval=0.9, dtype=jnp.float32)
        obj = (jax.random.uniform(ko, (batch, S, S)) > 0.5).astype(jnp.float32)
        tgt = tgt.at[..., 4].set(obj)
        tgt = tgt.at[..., 9].set(obj)
        return prd, tgt

    # --- batch=2: single-block fast path --------------------------------
    pred, target = make_inputs(k1, k2, k3, 2)
    ref = yolo_loss_ref(pred, target, S=S, B=B, C=C)
    loss = jax.block_until_ready(yolo_loss_pallas(pred, target, S=S, B=B, C=C))
    np.testing.assert_allclose(np.asarray(loss), ref, rtol=5e-3, atol=5e-3)

    # --- batch=2, tiny tiles: multi-tile, dual-core split with an odd tile
    #     count (phantom step) and ragged-tail masking ---------------------
    loss_tiled = jax.block_until_ready(
        yolo_loss_pallas(pred, target, S=S, B=B, C=C, max_cell_tile=24))
    np.testing.assert_allclose(np.asarray(loss_tiled), ref, rtol=5e-3, atol=5e-3)

    # --- batch=16: single block with chunked fori_loop + remainder chunk --
    pred2, target2 = make_inputs(k4, k5, k6, 16)
    ref2 = yolo_loss_ref(pred2, target2, S=S, B=B, C=C)
    loss2 = jax.block_until_ready(
        yolo_loss_pallas(pred2, target2, S=S, B=B, C=C, chunk_cells=256))
    np.testing.assert_allclose(np.asarray(loss2), ref2, rtol=5e-3, atol=5e-3)

    # --- batch=16: multi-tile (even split) + chunked fori inside each tile
    loss3 = jax.block_until_ready(
        yolo_loss_pallas(pred2, target2, S=S, B=B, C=C,
                         max_cell_tile=256, chunk_cells=64))
    np.testing.assert_allclose(np.asarray(loss3), ref2, rtol=5e-3, atol=5e-3)

    print("KERNEL_OK")
</pallas_src>

<mosaic_0001>
module attributes {stable_mosaic.version = 11 : i64} {
  func.func @_yolo_loss_kernel(%arg0: i32, %arg1: i32, %arg2: memref<98x30xf32, #tpu.memory_space<vmem>>, %arg3: memref<98x30xf32, #tpu.memory_space<vmem>>, %arg4: memref<1x1x1xf32, #tpu.memory_space<vmem>>) attributes {dimension_semantics = [#tpu.dimension_semantics<parallel>, #tpu.dimension_semantics<arbitrary>], iteration_bounds = array<i64: 1, 1>, scalar_prefetch = 0 : i64, scratch_operands = 0 : i64, tpu.core_type = #tpu.core_type<tc>, window_params = [{transform_indices = @transform_0, window_bounds = array<i64: 98, 30>}, {transform_indices = @transform_1, window_bounds = array<i64: 98, 30>}, {transform_indices = @transform_2, window_bounds = array<i64: 1, 1, 1>}]} {
    %c1_i32 = arith.constant 1 : i32
    %0 = arith.muli %arg0, %c1_i32 : i32
    %1 = arith.addi %0, %arg1 : i32
    %c98_i32 = arith.constant 98 : i32
    %2 = arith.muli %1, %c98_i32 : i32
    %c0_i32 = arith.constant 0 : i32
    %3 = arith.cmpi eq, %arg1, %c0_i32 : i32
    %4 = arith.extui %3 : i1 to i32
    %c0_i32_0 = arith.constant 0 : i32
    %5 = arith.cmpi ne, %4, %c0_i32_0 : i32
    scf.if %5 {
      %cst_55 = arith.constant 0.000000e+00 : f32
      %297 = vector.broadcast %cst_55 : f32 to vector<1x1x1xf32>
      %c0_56 = arith.constant 0 : index
      %c0_57 = arith.constant 0 : index
      %c0_58 = arith.constant 0 : index
      %298 = vector.load %arg4[%c0_56, %c0_57, %c0_58] : memref<1x1x1xf32, #tpu.memory_space<vmem>>, vector<1x1x1xf32>
      tpu.vector_store %arg4[%c0_56, %c0_57, %c0_58], %297 {strides = array<i32>} : memref<1x1x1xf32, #tpu.memory_space<vmem>>, vector<1x1x1xf32>,
    } else {
    }
    %6 = tpu.iota {dimensions = array<i32: 1>} : vector<1x98xi32>
    %c0 = arith.constant 0 : index
    %c0_1 = arith.constant 0 : index
    %7 = vector.load %arg2[%c0, %c0_1] : memref<98x30xf32, #tpu.memory_space<vmem>>, vector<98x30xf32>
    %c0_2 = arith.constant 0 : index
    %c0_3 = arith.constant 0 : index
    %8 = vector.load %arg3[%c0_2, %c0_3] : memref<98x30xf32, #tpu.memory_space<vmem>>, vector<98x30xf32>
    %9 = tpu.transpose %7, [1, 0] : vector<98x30xf32> -> vector<30x98xf32>
    %10 = tpu.transpose %8, [1, 0] : vector<98x30xf32> -> vector<30x98xf32>
    %11 = vector.extract_strided_slice %10 {offsets = [4, 0], sizes = [1, 98], strides = [1, 1]} : vector<30x98xf32> to vector<1x98xf32>
    %cst = arith.constant 0.000000e+00 : f32
    %12 = vector.broadcast %cst : f32 to vector<1x98xf32>
    %13 = arith.cmpf ogt, %11, %12 : vector<1x98xf32>
    %14 = vector.extract_strided_slice %10 {offsets = [4, 0], sizes = [1, 98], strides = [1, 1]} : vector<30x98xf32> to vector<1x98xf32>
    %cst_4 = arith.constant 0.000000e+00 : f32
    %15 = vector.broadcast %cst_4 : f32 to vector<1x98xf32>
    %16 = arith.cmpf oeq, %14, %15 : vector<1x98xf32>
    %17 = arith.extui %16 : vector<1x98xi1> to vector<1x98xi32>
    %18 = arith.sitofp %17 : vector<1x98xi32> to vector<1x98xf32>
    %19 = vector.extract_strided_slice %9 {offsets = [0, 0], sizes = [4, 98], strides = [1, 1]} : vector<30x98xf32> to vector<4x98xf32>
    %20 = vector.extract_strided_slice %19 {offsets = [0, 0], sizes = [1, 98], strides = [1, 1]} : vector<4x98xf32> to vector<1x98xf32>
    %cst_5 = arith.constant 0.142857149 : f32
    %21 = vector.broadcast %cst_5 : f32 to vector<1x98xf32>
    %22 = arith.mulf %20, %21 : vector<1x98xf32>
    %23 = vector.extract_strided_slice %19 {offsets = [1, 0], sizes = [1, 98], strides = [1, 1]} : vector<4x98xf32> to vector<1x98xf32>
    %cst_6 = arith.constant 0.142857149 : f32
    %24 = vector.broadcast %cst_6 : f32 to vector<1x98xf32>
    %25 = arith.mulf %23, %24 : vector<1x98xf32>
    %26 = vector.extract_strided_slice %19 {offsets = [2, 0], sizes = [1, 98], strides = [1, 1]} : vector<4x98xf32> to vector<1x98xf32>
    %cst_7 = arith.constant 5.000000e-01 : f32
    %27 = vector.broadcast %cst_7 : f32 to vector<1x98xf32>
    %28 = arith.mulf %27, %26 : vector<1x98xf32>
    %29 = vector.extract_strided_slice %19 {offsets = [3, 0], sizes = [1, 98], strides = [1, 1]} : vector<4x98xf32> to vector<1x98xf32>
    %cst_8 = arith.constant 5.000000e-01 : f32
    %30 = vector.broadcast %cst_8 : f32 to vector<1x98xf32>
    %31 = arith.mulf %30, %29 : vector<1x98xf32>
    %32 = arith.subf %22, %28 : vector<1x98xf32>
    %33 = arith.subf %25, %31 : vector<1x98xf32>
    %34 = arith.addf %22, %28 : vector<1x98xf32>
    %35 = arith.addf %25, %31 : vector<1x98xf32>
    %36 = vector.extract_strided_slice %9 {offsets = [5, 0], sizes = [4, 98], strides = [1, 1]} : vector<30x98xf32> to vector<4x98xf32>
    %37 = vector.extract_strided_slice %36 {offsets = [0, 0], sizes = [1, 98], strides = [1, 1]} : vector<4x98xf32> to vector<1x98xf32>
    %cst_9 = arith.constant 0.142857149 : f32
    %38 = vector.broadcast %cst_9 : f32 to vector<1x98xf32>
    %39 = arith.mulf %37, %38 : vector<1x98xf32>
    %40 = vector.extract_strided_slice %36 {offsets = [1, 0], sizes = [1, 98], strides = [1, 1]} : vector<4x98xf32> to vector<1x98xf32>
    %cst_10 = arith.constant 0.142857149 : f32
    %41 = vector.broadcast %cst_10 : f32 to vector<1x98xf32>
    %42 = arith.mulf %40, %41 : vector<1x98xf32>
    %43 = vector.extract_strided_slice %36 {offsets = [2, 0], sizes = [1, 98], strides = [1, 1]} : vector<4x98xf32> to vector<1x98xf32>
    %cst_11 = arith.constant 5.000000e-01 : f32
    %44 = vector.broadcast %cst_11 : f32 to vector<1x98xf32>
    %45 = arith.mulf %44, %43 : vector<1x98xf32>
    %46 = vector.extract_strided_slice %36 {offsets = [3, 0], sizes = [1, 98], strides = [1, 1]} : vector<4x98xf32> to vector<1x98xf32>
    %cst_12 = arith.constant 5.000000e-01 : f32
    %47 = vector.broadcast %cst_12 : f32 to vector<1x98xf32>
    %48 = arith.mulf %47, %46 : vector<1x98xf32>
    %49 = arith.subf %39, %45 : vector<1x98xf32>
    %50 = arith.subf %42, %48 : vector<1x98xf32>
    %51 = arith.addf %39, %45 : vector<1x98xf32>
    %52 = arith.addf %42, %48 : vector<1x98xf32>
    %53 = vector.extract_strided_slice %10 {offsets = [0, 0], sizes = [4, 98], strides = [1, 1]} : vector<30x98xf32> to vector<4x98xf32>
    %54 = vector.extract_strided_slice %53 {offsets = [0, 0], sizes = [1, 98], strides = [1, 1]} : vector<4x98xf32> to vector<1x98xf32>
    %cst_13 = arith.constant 0.142857149 : f32
    %55 = vector.broadcast %cst_13 : f32 to vector<1x98xf32>
    %56 = arith.mulf %54, %55 : vector<1x98xf32>
    %57 = vector.extract_strided_slice %53 {offsets = [1, 0], sizes = [1, 98], strides = [1, 1]} : vector<4x98xf32> to vector<1x98xf32>
    %cst_14 = arith.constant 0.142857149 : f32
    %58 = vector.broadcast %cst_14 : f32 to vector<1x98xf32>
    %59 = arith.mulf %57, %58 : vector<1x98xf32>
    %60 = vector.extract_strided_slice %53 {offsets = [2, 0], sizes = [1, 98], strides = [1, 1]} : vector<4x98xf32> to vector<1x98xf32>
    %cst_15 = arith.constant 5.000000e-01 : f32
    %61 = vector.broadcast %cst_15 : f32 to vector<1x98xf32>
    %62 = arith.mulf %61, %60 : vector<1x98xf32>
    %63 = vector.extract_strided_slice %53 {offsets = [3, 0], sizes = [1, 98], strides = [1, 1]} : vector<4x98xf32> to vector<1x98xf32>
    %cst_16 = arith.constant 5.000000e-01 : f32
    %64 = vector.broadcast %cst_16 : f32 to vector<1x98xf32>
    %65 = arith.mulf %64, %63 : vector<1x98xf32>
    %66 = arith.subf %56, %62 : vector<1x98xf32>
    %67 = arith.subf %59, %65 : vector<1x98xf32>
    %68 = arith.addf %56, %62 : vector<1x98xf32>
    %69 = arith.addf %59, %65 : vector<1x98xf32>
    %70 = vector.extract_strided_slice %10 {offsets = [5, 0], sizes = [4, 98], strides = [1, 1]} : vector<30x98xf32> to vector<4x98xf32>
    %71 = vector.extract_strided_slice %70 {offsets = [0, 0], sizes = [1, 98], strides = [1, 1]} : vector<4x98xf32> to vector<1x98xf32>
    %cst_17 = arith.constant 0.142857149 : f32
    %72 = vector.broadcast %cst_17 : f32 to vector<1x98xf32>
    %73 = arith.mulf %71, %72 : vector<1x98xf32>
    %74 = vector.extract_strided_slice %70 {offsets = [1, 0], sizes = [1, 98], strides = [1, 1]} : vector<4x98xf32> to vector<1x98xf32>
    %cst_18 = arith.constant 0.142857149 : f32
    %75 = vector.broadcast %cst_18 : f32 to vector<1x98xf32>
    %76 = arith.mulf %74, %75 : vector<1x98xf32>
    %77 = vector.extract_strided_slice %70 {offsets = [2, 0], sizes = [1, 98], strides = [1, 1]} : vector<4x98xf32> to vector<1x98xf32>
    %cst_19 = arith.constant 5.000000e-01 : f32
    %78 = vector.broadcast %cst_19 : f32 to vector<1x98xf32>
    %79 = arith.mulf %78, %77 : vector<1x98xf32>
    %80 = vector.extract_strided_slice %70 {offsets = [3, 0], sizes = [1, 98], strides = [1, 1]} : vector<4x98xf32> to vector<1x98xf32>
    %cst_20 = arith.constant 5.000000e-01 : f32
    %81 = vector.broadcast %cst_20 : f32 to vector<1x98xf32>
    %82 = arith.mulf %81, %80 : vector<1x98xf32>
    %83 = arith.subf %73, %79 : vector<1x98xf32>
    %84 = arith.subf %76, %82 : vector<1x98xf32>
    %85 = arith.addf %73, %79 : vector<1x98xf32>
    %86 = arith.addf %76, %82 : vector<1x98xf32>
    %87 = arith.subf %34, %32 : vector<1x98xf32>
    %88 = arith.subf %35, %33 : vector<1x98xf32>
    %89 = arith.mulf %87, %88 : vector<1x98xf32>
    %90 = arith.subf %51, %49 : vector<1x98xf32>
    %91 = arith.subf %52, %50 : vector<1x98xf32>
    %92 = arith.mulf %90, %91 : vector<1x98xf32>
    %93 = arith.subf %68, %66 : vector<1x98xf32>
    %94 = arith.subf %69, %67 : vector<1x98xf32>
    %95 = arith.mulf %93, %94 : vector<1x98xf32>
    %96 = arith.subf %85, %83 : vector<1x98xf32>
    %97 = arith.subf %86, %84 : vector<1x98xf32>
    %98 = arith.mulf %96, %97 : vector<1x98xf32>
    %99 = arith.minimumf %34, %68 : vector<1x98xf32>
    %100 = arith.maximumf %32, %66 : vector<1x98xf32>
    %101 = arith.subf %99, %100 : vector<1x98xf32>
    %cst_21 = arith.constant 0.000000e+00 : f32
    %102 = vector.broadcast %cst_21 : f32 to vector<1x98xf32>
    %103 = arith.maximumf %101, %102 : vector<1x98xf32>
    %104 = arith.minimumf %35, %69 : vector<1x98xf32>
    %105 = arith.maximumf %33, %67 : vector<1x98xf32>
    %106 = arith.subf %104, %105 : vector<1x98xf32>
    %cst_22 = arith.constant 0.000000e+00 : f32
    %107 = vector.broadcast %cst_22 : f32 to vector<1x98xf32>
    %108 = arith.maximumf %106, %107 : vector<1x98xf32>
    %109 = arith.mulf %103, %108 : vector<1x98xf32>
    %110 = arith.addf %89, %95 : vector<1x98xf32>
    %111 = arith.subf %110, %109 : vector<1x98xf32>
    %cst_23 = arith.constant 9.99999996E-13 : f32
    %112 = vector.broadcast %cst_23 : f32 to vector<1x98xf32>
    %113 = arith.addf %111, %112 : vector<1x98xf32>
    %114 = arith.minimumf %51, %68 : vector<1x98xf32>
    %115 = arith.maximumf %49, %66 : vector<1x98xf32>
    %116 = arith.subf %114, %115 : vector<1x98xf32>
    %cst_24 = arith.constant 0.000000e+00 : f32
    %117 = vector.broadcast %cst_24 : f32 to vector<1x98xf32>
    %118 = arith.maximumf %116, %117 : vector<1x98xf32>
    %119 = arith.minimumf %52, %69 : vector<1x98xf32>
    %120 = arith.maximumf %50, %67 : vector<1x98xf32>
    %121 = arith.subf %119, %120 : vector<1x98xf32>
    %cst_25 = arith.constant 0.000000e+00 : f32
    %122 = vector.broadcast %cst_25 : f32 to vector<1x98xf32>
    %123 = arith.maximumf %121, %122 : vector<1x98xf32>
    %124 = arith.mulf %118, %123 : vector<1x98xf32>
    %125 = arith.addf %92, %95 : vector<1x98xf32>
    %126 = arith.subf %125, %124 : vector<1x98xf32>
    %cst_26 = arith.constant 9.99999996E-13 : f32
    %127 = vector.broadcast %cst_26 : f32 to vector<1x98xf32>
    %128 = arith.addf %126, %127 : vector<1x98xf32>
    %129 = arith.minimumf %34, %85 : vector<1x98xf32>
    %130 = arith.maximumf %32, %83 : vector<1x98xf32>
    %131 = arith.subf %129, %130 : vector<1x98xf32>
    %cst_27 = arith.constant 0.000000e+00 : f32
    %132 = vector.broadcast %cst_27 : f32 to vector<1x98xf32>
    %133 = arith.maximumf %131, %132 : vector<1x98xf32>
    %134 = arith.minimumf %35, %86 : vector<1x98xf32>
    %135 = arith.maximumf %33, %84 : vector<1x98xf32>
    %136 = arith.subf %134, %135 : vector<1x98xf32>
    %cst_28 = arith.constant 0.000000e+00 : f32
    %137 = vector.broadcast %cst_28 : f32 to vector<1x98xf32>
    %138 = arith.maximumf %136, %137 : vector<1x98xf32>
    %139 = arith.mulf %133, %138 : vector<1x98xf32>
    %140 = arith.addf %89, %98 : vector<1x98xf32>
    %141 = arith.subf %140, %139 : vector<1x98xf32>
    %cst_29 = arith.constant 9.99999996E-13 : f32
    %142 = vector.broadcast %cst_29 : f32 to vector<1x98xf32>
    %143 = arith.addf %141, %142 : vector<1x98xf32>
    %144 = arith.minimumf %51, %85 : vector<1x98xf32>
    %145 = arith.maximumf %49, %83 : vector<1x98xf32>
    %146 = arith.subf %144, %145 : vector<1x98xf32>
    %cst_30 = arith.constant 0.000000e+00 : f32
    %147 = vector.broadcast %cst_30 : f32 to vector<1x98xf32>
    %148 = arith.maximumf %146, %147 : vector<1x98xf32>
    %149 = arith.minimumf %52, %86 : vector<1x98xf32>
    %150 = arith.maximumf %50, %84 : vector<1x98xf32>
    %151 = arith.subf %149, %150 : vector<1x98xf32>
    %cst_31 = arith.constant 0.000000e+00 : f32
    %152 = vector.broadcast %cst_31 : f32 to vector<1x98xf32>
    %153 = arith.maximumf %151, %152 : vector<1x98xf32>
    %154 = arith.mulf %148, %153 : vector<1x98xf32>
    %155 = arith.addf %92, %98 : vector<1x98xf32>
    %156 = arith.subf %155, %154 : vector<1x98xf32>
    %cst_32 = arith.constant 9.99999996E-13 : f32
    %157 = vector.broadcast %cst_32 : f32 to vector<1x98xf32>
    %158 = arith.addf %156, %157 : vector<1x98xf32>
    %159 = arith.mulf %124, %113 : vector<1x98xf32>
    %160 = arith.mulf %109, %128 : vector<1x98xf32>
    %161 = arith.cmpf ogt, %159, %160 : vector<1x98xf32>
    %162 = arith.mulf %154, %143 : vector<1x98xf32>
    %163 = arith.mulf %139, %158 : vector<1x98xf32>
    %164 = arith.cmpf ogt, %162, %163 : vector<1x98xf32>
    %165 = arith.select %161, %124, %109 : vector<1x98xi1>, vector<1x98xf32>
    %166 = arith.select %161, %128, %113 : vector<1x98xi1>, vector<1x98xf32>
    %167 = tpu.reciprocal %166 {approx = true} : vector<1x98xf32> -> vector<1x98xf32>
    %168 = arith.mulf %165, %167 : vector<1x98xf32>
    %169 = arith.select %164, %154, %139 : vector<1x98xi1>, vector<1x98xf32>
    %170 = arith.select %164, %158, %143 : vector<1x98xi1>, vector<1x98xf32>
    %171 = tpu.reciprocal %170 {approx = true} : vector<1x98xf32> -> vector<1x98xf32>
    %172 = arith.mulf %169, %171 : vector<1x98xf32>
    %cst_33 = arith.constant dense<true> : vector<1x98xi1>
    %173 = arith.xori %161, %cst_33 : vector<1x98xi1>
    %cst_34 = arith.constant dense<true> : vector<1x98xi1>
    %174 = arith.xori %164, %cst_34 : vector<1x98xi1>
    %175 = arith.ori %173, %174 : vector<1x98xi1>
    %176 = arith.extui %175 : vector<1x98xi1> to vector<1x98xi32>
    %177 = arith.sitofp %176 : vector<1x98xi32> to vector<1x98xf32>
    %178 = arith.ori %161, %164 : vector<1x98xi1>
    %179 = arith.extui %178 : vector<1x98xi1> to vector<1x98xi32>
    %180 = arith.sitofp %179 : vector<1x98xi32> to vector<1x98xf32>
    %cst_35 = arith.constant 0.000000e+00 : f32
    %181 = vector.broadcast %cst_35 : f32 to vector<1x98xf32>
    %182 = arith.select %173, %168, %181 : vector<1x98xi1>, vector<1x98xf32>
    %183 = arith.select %174, %172, %182 : vector<1x98xi1>, vector<1x98xf32>
    %cst_36 = arith.constant 0.000000e+00 : f32
    %184 = vector.broadcast %cst_36 : f32 to vector<1x98xf32>
    %185 = arith.select %161, %168, %184 : vector<1x98xi1>, vector<1x98xf32>
    %186 = arith.select %164, %172, %185 : vector<1x98xi1>, vector<1x98xf32>
    %187 = vector.extract_strided_slice %9 {offsets = [0, 0], sizes = [1, 98], strides = [1, 1]} : vector<30x98xf32> to vector<1x98xf32>
    %188 = vector.extract_strided_slice %10 {offsets = [0, 0], sizes = [1, 98], strides = [1, 1]} : vector<30x98xf32> to vector<1x98xf32>
    %189 = arith.subf %187, %188 : vector<1x98xf32>
    %190 = arith.mulf %189, %189 : vector<1x98xf32>
    %191 = vector.extract_strided_slice %9 {offsets = [1, 0], sizes = [1, 98], strides = [1, 1]} : vector<30x98xf32> to vector<1x98xf32>
    %192 = vector.extract_strided_slice %10 {offsets = [1, 0], sizes = [1, 98], strides = [1, 1]} : vector<30x98xf32> to vector<1x98xf32>
    %193 = arith.subf %191, %192 : vector<1x98xf32>
    %194 = arith.mulf %193, %193 : vector<1x98xf32>
    %195 = arith.addf %190, %194 : vector<1x98xf32>
    %196 = vector.extract_strided_slice %9 {offsets = [2, 0], sizes = [1, 98], strides = [1, 1]} : vector<30x98xf32> to vector<1x98xf32>
    %197 = arith.addf %195, %196 : vector<1x98xf32>
    %198 = vector.extract_strided_slice %10 {offsets = [2, 0], sizes = [1, 98], strides = [1, 1]} : vector<30x98xf32> to vector<1x98xf32>
    %199 = arith.addf %197, %198 : vector<1x98xf32>
    %200 = vector.extract_strided_slice %9 {offsets = [2, 0], sizes = [1, 98], strides = [1, 1]} : vector<30x98xf32> to vector<1x98xf32>
    %201 = vector.extract_strided_slice %10 {offsets = [2, 0], sizes = [1, 98], strides = [1, 1]} : vector<30x98xf32> to vector<1x98xf32>
    %202 = arith.mulf %200, %201 : vector<1x98xf32>
    %203 = math.sqrt %202 : vector<1x98xf32>
    %cst_37 = arith.constant 2.000000e+00 : f32
    %204 = vector.broadcast %cst_37 : f32 to vector<1x98xf32>
    %205 = arith.mulf %204, %203 : vector<1x98xf32>
    %206 = arith.subf %199, %205 : vector<1x98xf32>
    %207 = vector.extract_strided_slice %9 {offsets = [3, 0], sizes = [1, 98], strides = [1, 1]} : vector<30x98xf32> to vector<1x98xf32>
    %208 = arith.addf %206, %207 : vector<1x98xf32>
    %209 = vector.extract_strided_slice %10 {offsets = [3, 0], sizes = [1, 98], strides = [1, 1]} : vector<30x98xf32> to vector<1x98xf32>
    %210 = arith.addf %208, %209 : vector<1x98xf32>
    %211 = vector.extract_strided_slice %9 {offsets = [3, 0], sizes = [1, 98], strides = [1, 1]} : vector<30x98xf32> to vector<1x98xf32>
    %212 = vector.extract_strided_slice %10 {offsets = [3, 0], sizes = [1, 98], strides = [1, 1]} : vector<30x98xf32> to vector<1x98xf32>
    %213 = arith.mulf %211, %212 : vector<1x98xf32>
    %214 = math.sqrt %213 : vector<1x98xf32>
    %cst_38 = arith.constant 2.000000e+00 : f32
    %215 = vector.broadcast %cst_38 : f32 to vector<1x98xf32>
    %216 = arith.mulf %215, %214 : vector<1x98xf32>
    %217 = arith.subf %210, %216 : vector<1x98xf32>
    %218 = vector.extract_strided_slice %9 {offsets = [5, 0], sizes = [1, 98], strides = [1, 1]} : vector<30x98xf32> to vector<1x98xf32>
    %219 = vector.extract_strided_slice %10 {offsets = [5, 0], sizes = [1, 98], strides = [1, 1]} : vector<30x98xf32> to vector<1x98xf32>
    %220 = arith.subf %218, %219 : vector<1x98xf32>
    %221 = arith.mulf %220, %220 : vector<1x98xf32>
    %222 = vector.extract_strided_slice %9 {offsets = [6, 0], sizes = [1, 98], strides = [1, 1]} : vector<30x98xf32> to vector<1x98xf32>
    %223 = vector.extract_strided_slice %10 {offsets = [6, 0], sizes = [1, 98], strides = [1, 1]} : vector<30x98xf32> to vector<1x98xf32>
    %224 = arith.subf %222, %223 : vector<1x98xf32>
    %225 = arith.mulf %224, %224 : vector<1x98xf32>
    %226 = arith.addf %221, %225 : vector<1x98xf32>
    %227 = vector.extract_strided_slice %9 {offsets = [7, 0], sizes = [1, 98], strides = [1, 1]} : vector<30x98xf32> to vector<1x98xf32>
    %228 = arith.addf %226, %227 : vector<1x98xf32>
    %229 = vector.extract_strided_slice %10 {offsets = [7, 0], sizes = [1, 98], strides = [1, 1]} : vector<30x98xf32> to vector<1x98xf32>
    %230 = arith.addf %228, %229 : vector<1x98xf32>
    %231 = vector.extract_strided_slice %9 {offsets = [7, 0], sizes = [1, 98], strides = [1, 1]} : vector<30x98xf32> to vector<1x98xf32>
    %232 = vector.extract_strided_slice %10 {offsets = [7, 0], sizes = [1, 98], strides = [1, 1]} : vector<30x98xf32> to vector<1x98xf32>
    %233 = arith.mulf %231, %232 : vector<1x98xf32>
    %234 = math.sqrt %233 : vector<1x98xf32>
    %cst_39 = arith.constant 2.000000e+00 : f32
    %235 = vector.broadcast %cst_39 : f32 to vector<1x98xf32>
    %236 = arith.mulf %235, %234 : vector<1x98xf32>
    %237 = arith.subf %230, %236 : vector<1x98xf32>
    %238 = vector.extract_strided_slice %9 {offsets = [8, 0], sizes = [1, 98], strides = [1, 1]} : vector<30x98xf32> to vector<1x98xf32>
    %239 = arith.addf %237, %238 : vector<1x98xf32>
    %240 = vector.extract_strided_slice %10 {offsets = [8, 0], sizes = [1, 98], strides = [1, 1]} : vector<30x98xf32> to vector<1x98xf32>
    %241 = arith.addf %239, %240 : vector<1x98xf32>
    %242 = vector.extract_strided_slice %9 {offsets = [8, 0], sizes = [1, 98], strides = [1, 1]} : vector<30x98xf32> to vector<1x98xf32>
    %243 = vector.extract_strided_slice %10 {offsets = [8, 0], sizes = [1, 98], strides = [1, 1]} : vector<30x98xf32> to vector<1x98xf32>
    %244 = arith.mulf %242, %243 : vector<1x98xf32>
    %245 = math.sqrt %244 : vector<1x98xf32>
    %cst_40 = arith.constant 2.000000e+00 : f32
    %246 = vector.broadcast %cst_40 : f32 to vector<1x98xf32>
    %247 = arith.mulf %246, %245 : vector<1x98xf32>
    %248 = arith.subf %241, %247 : vector<1x98xf32>
    %249 = vector.extract_strided_slice %9 {offsets = [4, 0], sizes = [1, 98], strides = [1, 1]} : vector<30x98xf32> to vector<1x98xf32>
    %250 = arith.subf %249, %183 : vector<1x98xf32>
    %251 = arith.mulf %250, %250 : vector<1x98xf32>
    %252 = arith.mulf %177, %251 : vector<1x98xf32>
    %253 = vector.extract_strided_slice %9 {offsets = [9, 0], sizes = [1, 98], strides = [1, 1]} : vector<30x98xf32> to vector<1x98xf32>
    %254 = arith.subf %253, %186 : vector<1x98xf32>
    %255 = arith.mulf %254, %254 : vector<1x98xf32>
    %256 = arith.mulf %180, %255 : vector<1x98xf32>
    %257 = arith.addf %252, %256 : vector<1x98xf32>
    %258 = arith.mulf %177, %217 : vector<1x98xf32>
    %259 = arith.mulf %180, %248 : vector<1x98xf32>
    %260 = arith.addf %258, %259 : vector<1x98xf32>
    %261 = vector.extract_strided_slice %9 {offsets = [4, 0], sizes = [1, 98], strides = [1, 1]} : vector<30x98xf32> to vector<1x98xf32>
    %262 = arith.mulf %261, %261 : vector<1x98xf32>
    %263 = vector.extract_strided_slice %9 {offsets = [9, 0], sizes = [1, 98], strides = [1, 1]} : vector<30x98xf32> to vector<1x98xf32>
    %264 = arith.mulf %263, %263 : vector<1x98xf32>
    %265 = arith.addf %262, %264 : vector<1x98xf32>
    %266 = arith.mulf %18, %265 : vector<1x98xf32>
    %267 = vector.extract_strided_slice %9 {offsets = [10, 0], sizes = [20, 98], strides = [1, 1]} : vector<30x98xf32> to vector<20x98xf32>
    %268 = vector.extract_strided_slice %10 {offsets = [10, 0], sizes = [20, 98], strides = [1, 1]} : vector<30x98xf32> to vector<20x98xf32>
    %269 = arith.subf %267, %268 : vector<20x98xf32>
    %270 = arith.mulf %269, %269 : vector<20x98xf32>
    %cst_41 = arith.constant dense<0.000000e+00> : vector<98xf32>
    %271 = vector.multi_reduction <add>, %270, %cst_41 [0] : vector<20x98xf32> to vector<98xf32>
    %272 = vector.shape_cast %271 : vector<98xf32> to vector<1x98xf32>
    %cst_42 = arith.constant 5.000000e+00 : f32
    %273 = vector.broadcast %cst_42 : f32 to vector<1x98xf32>
    %274 = arith.mulf %273, %260 : vector<1x98xf32>
    %275 = arith.addf %274, %257 : vector<1x98xf32>
    %276 = arith.addf %275, %272 : vector<1x98xf32>
    %cst_43 = arith.constant 0.000000e+00 : f32
    %277 = vector.broadcast %cst_43 : f32 to vector<1x98xf32>
    %278 = arith.select %13, %276, %277 : vector<1x98xi1>, vector<1x98xf32>
    %cst_44 = arith.constant 5.000000e-01 : f32
    %279 = vector.broadcast %cst_44 : f32 to vector<1x98xf32>
    %280 = arith.mulf %279, %266 : vector<1x98xf32>
    %281 = arith.addf %278, %280 : vector<1x98xf32>
    %282 = vector.broadcast %2 : i32 to vector<1x98xi32>
    %283 = arith.addi %282, %6 : vector<1x98xi32>
    %c98_i32_45 = arith.constant 98 : i32
    %284 = vector.broadcast %c98_i32_45 : i32 to vector<1x98xi32>
    %285 = arith.cmpi slt, %283, %284 : vector<1x98xi32>
    %cst_46 = arith.constant 0.000000e+00 : f32
    %286 = vector.broadcast %cst_46 : f32 to vector<1x98xf32>
    %287 = arith.select %285, %281, %286 : vector<1x98xi1>, vector<1x98xf32>
    %288 = vector.shape_cast %287 : vector<1x98xf32> to vector<1x1x98xf32>
    %cst_47 = arith.constant dense<0.000000e+00> : vector<1xf32>
    %289 = vector.multi_reduction <add>, %288, %cst_47 [1, 2] : vector<1x1x98xf32> to vector<1xf32>
    %290 = vector.shape_cast %289 : vector<1xf32> to vector<1x1x1xf32>
    %291 = vector.extract %290[0, 0, 0] : f32 from vector<1x1x1xf32>
    %c0_48 = arith.constant 0 : index
    %c0_49 = arith.constant 0 : index
    %c0_50 = arith.constant 0 : index
    %292 = vector.load %arg4[%c0_48, %c0_49, %c0_50] : memref<1x1x1xf32, #tpu.memory_space<vmem>>, vector<1x1x1xf32>
    %cst_51 = arith.constant 5.000000e-01 : f32
    %293 = arith.mulf %291, %cst_51 : f32
    %294 = vector.broadcast %293 : f32 to vector<1x1x1xf32>
    %295 = arith.addf %292, %294 : vector<1x1x1xf32>
    %c0_52 = arith.constant 0 : index
    %c0_53 = arith.constant 0 : index
    %c0_54 = arith.constant 0 : index
    %296 = vector.load %arg4[%c0_52, %c0_53, %c0_54] : memref<1x1x1xf32, #tpu.memory_space<vmem>>, vector<1x1x1xf32>
    tpu.vector_store %arg4[%c0_52, %c0_53, %c0_54], %295 {strides = array<i32>} : memref<1x1x1xf32, #tpu.memory_space<vmem>>, vector<1x1x1xf32>,
    return
  }
  func.func @transform_0(%arg0: i32, %arg1: i32) -> (i32, i32) {
    %c1_i32 = arith.constant 1 : i32
    %0 = arith.muli %arg0, %c1_i32 : i32
    %1 = arith.addi %0, %arg1 : i32
    %c0_i32 = arith.constant 0 : i32
    %2 = arith.minsi %1, %c0_i32 : i32
    %c0_i32_0 = arith.constant 0 : i32
    %c0_i32_1 = arith.constant 0 : i32
    return %2, %c0_i32_0 : i32, i32
  }
  func.func @transform_1(%arg0: i32, %arg1: i32) -> (i32, i32) {
    %c1_i32 = arith.constant 1 : i32
    %0 = arith.muli %arg0, %c1_i32 : i32
    %1 = arith.addi %0, %arg1 : i32
    %c0_i32 = arith.constant 0 : i32
    %2 = arith.minsi %1, %c0_i32 : i32
    %c0_i32_0 = arith.constant 0 : i32
    %c0_i32_1 = arith.constant 0 : i32
    return %2, %c0_i32_0 : i32, i32
  }
  func.func @transform_2(%arg0: i32, %arg1: i32) -> (i32, i32, i32) {
    %c0_i32 = arith.constant 0 : i32
    %c0_i32_0 = arith.constant 0 : i32
    %c0_i32_1 = arith.constant 0 : i32
    return %arg0, %c0_i32, %c0_i32_0 : i32, i32, i32
  }
}

</mosaic_0001>

<bundles_post_ra>
// kernel: tpu_custom_call.1
= control target key start
LH: loop header
LB: loop body
LE: loop exit
PB: predicated region body
PF: predicated region fallthrough
CT: control target
= control target key end

     0   :  { %s797_s0 = inlined_call_operand.vmem [shape: f32[98,30], index: 0, kind: input, shape index: {}]   ;;  %s798_s1 = inlined_call_operand.vmem [shape: f32[98,30], index: 1, kind: input, shape index: {}]   ;;  %s799_s2 = inlined_call_operand.hbm [shape: f32[1,1,1], index: 2, kind: output, shape index: {}]  }
   0x1   :  { %v99_v0 = vld [vmem:[%s798_s1] sm:$0xff]  ;;  %v100_v2 = vld [vmem:[%s798_s1 + $0x8] sm:$0xff]  ;;  %v101_v4 = vld [vmem:[%s798_s1 + $0x10] sm:$0xff] }
   0x2   :  { %v86_v1 = vld [vmem:[%s797_s0] sm:$0xff]  ;;  %144 = vxpose.xlu1.b32.start [1/13] (short) (narrow) %v99_v0, 32  ;;  %v87_v3 = vld [vmem:[%s797_s0 + $0x8] sm:$0xff]  ;;  %v88_v5 = vld [vmem:[%s797_s0 + $0x10] sm:$0xff] }
   0x3   :  { %112 = vxpose.xlu0.b32.start [1/13] (short) (narrow) %v86_v1, 32 }
   0x6   :  { %145 = vxpose.xlu1.b32.cont [2/13] (short) (narrow) %v100_v2, 32 }
   0x7   :  { %113 = vxpose.xlu0.b32.cont [2/13] (short) (narrow) %v87_v3, 32 }
   0x8   :  { %7 = vsyncpa [#allocation3], 0  ;;  %v102_v6 = vld [vmem:[%s798_s1 + $0x18] sm:$0xff]  ;;  %v103_v8 = vld [vmem:[%s798_s1 + $0x20] sm:$0xff]  ;;  %vm448_vm2 = vcmask 1045504   ;;  %vm457_vm3 = vcmask 801792  }
   0x9   :  { %v89_v7 = vld [vmem:[%s797_s0 + $0x18] sm:$0xff]  ;;  %v90_v9 = vld [vmem:[%s797_s0 + $0x20] sm:$0xff]  ;;  %v104_v10 = vld [vmem:[%s798_s1 + $0x28] sm:$0xff]  ;;  %vm461_vm4 = vcmask 797696   ;;  %vm569_vm9 = vmmov 1   ;;  %s571_s5 = smov [#allocation2]  }
   0xa   :  { %146 = vxpose.xlu1.b32.cont [3/13] (short) (narrow) %v101_v4, 32  ;;  %v91_v11 = vld [vmem:[%s797_s0 + $0x28] sm:$0xff]  ;;  %v105_v12 = vld [vmem:[%s798_s1 + $0x30] sm:$0xff]  ;;  %v106_v14 = vld [vmem:[%s798_s1 + $0x38] sm:$0xff]  ;;  %s509_s6 = sshll.u32 %s571_s5, 4  ;;  %s510_s6 = int_to_ptr.vmem [resolvable:$true] %s509_s6 }
   0xb   :  { %114 = vxpose.xlu0.b32.cont [3/13] (short) (narrow) %v88_v5, 32  ;;  %v92_v13 = vld [vmem:[%s797_s0 + $0x30] sm:$0xff]  ;;  %v93_v15 = vld [vmem:[%s797_s0 + $0x38] sm:$0xff]  ;;  %v107_v16 = vld [vmem:[%s798_s1 + $0x40] sm:$0xff]  ;;  %s545_s7 = scalar_lea.vmem %s510_s6, 16  ;;  %s549_s8 = scalar_lea.vmem %s510_s6, 32 }
   0xc   :  { %v94_v17 = vld [vmem:[%s797_s0 + $0x40] sm:$0xff]  ;;  %v108_v18 = vld [vmem:[%s798_s1 + $0x48] sm:$0xff]  ;;  %v109_v20 = vld [vmem:[%s798_s1 + $0x50] sm:$0xff]  ;;  %p546_p0 = scmp.ne.s32.totalorder %s510_s6, %s545_s7  ;;  %p550_p1 = scmp.lt.s32.totalorder %s510_s6, %s510_s6 }
   0xd   :  { %v95_v19 = vld [vmem:[%s797_s0 + $0x48] sm:$0xff]  ;;  %v96_v21 = vld [vmem:[%s797_s0 + $0x50] sm:$0xff]  ;;  %v110_v22 = vld [vmem:[%s798_s1 + $0x58] sm:$0xff]  ;;  %p551_p2 = scmp.lt.s32.totalorder %s549_s8, %s545_s7 }
   0xe   :  { %147 = vxpose.xlu1.b32.cont [4/13] (short) (narrow) %v102_v6, 32  ;;  %v97_v23 = vld [vmem:[%s797_s0 + $0x58] sm:$0xff]  ;;  %v111_v24 = vld [vmem:[%s798_s1 + $0x60] sm:$0x3] }
   0xf   :  { %115 = vxpose.xlu0.b32.cont [4/13] (short) (narrow) %v89_v7, 32  ;;  %v98_v25 = vld [vmem:[%s797_s0 + $0x60] sm:$0x3]  ;;  %p552_p3 = por %p551_p2, %p550_p1 }
  0x11   :  { %p553_p4 = pnand %p552_p3, %p546_p0 }
  0x12   :  { %148 = vxpose.xlu1.b32.cont [5/13] (short) (narrow) %v103_v8, 32 }
  0x13   :  { %116 = vxpose.xlu0.b32.cont [5/13] (short) (narrow) %v90_v9, 32 }
  0x16   :  { %149 = vxpose.xlu1.b32.cont [6/13] (short) (narrow) %v104_v10, 32 }
  0x17   :  { %117 = vxpose.xlu0.b32.cont [6/13] (short) (narrow) %v91_v11, 32 }
  0x1a   :  { %150 = vxpose.xlu1.b32.cont [7/13] (short) (narrow) %v105_v12, 32 }
  0x1b   :  { %118 = vxpose.xlu0.b32.cont [7/13] (short) (narrow) %v92_v13, 32 }
  0x1e   :  { %151 = vxpose.xlu1.b32.cont [8/13] (short) (narrow) %v106_v14, 32 }
  0x1f   :  { %119 = vxpose.xlu0.b32.cont [8/13] (short) (narrow) %v93_v15, 32 }
  0x22   :  { %152 = vxpose.xlu1.b32.cont [9/13] (short) (narrow) %v107_v16, 32 }
  0x23   :  { %120 = vxpose.xlu0.b32.cont [9/13] (short) (narrow) %v94_v17, 32 }
  0x26   :  { %153 = vxpose.xlu1.b32.cont [10/13] (short) (narrow) %v108_v18, 32 }
  0x27   :  { %121 = vxpose.xlu0.b32.cont [10/13] (short) (narrow) %v95_v19, 32 }
  0x2a   :  { %154 = vxpose.xlu1.b32.cont [11/13] (short) (narrow) %v109_v20, 32 }
  0x2b   :  { %122 = vxpose.xlu0.b32.cont [11/13] (short) (narrow) %v96_v21, 32 }
  0x2e   :  { %155 = vxpose.xlu1.b32.cont [12/13] (short) (narrow) %v110_v22, 32 }
  0x2f   :  { %123 = vxpose.xlu0.b32.cont [12/13] (short) (narrow) %v97_v23, 32 }
  0x32   :  { %156 = vxpose.xlu1.b32.end [13/13] (short) (narrow) %v111_v24, 32 }
  0x33   :  { %124 = vxpose.xlu0.b32.end [13/13] (short) (narrow) %v98_v25, 32 }
  0x82   :  { %v665_v26 = vpop.trf.xlu1 }
  0x83   :  { %v667_v27 = vpop.trf.xlu0  ;;  %v194_v28 = vmul.f32 0.5, %v665_v26  ;;  %v193_v30 = vmul.f32 0.14285715, %v665_v26  ;;  %vm177_vm14 = vcmp.eq.f32.partialorder %v665_v26, 0.0  ;;  %vm176_vm15 = vcmp.gt.f32.partialorder %v665_v26, 0.0 }
  0x84   :  { %v181_v29 = vmul.f32 0.5, %v667_v27  ;;  %v180_v32 = vmul.f32 0.14285715, %v667_v27  ;;  %v675_v34 = vmul.f32 %v665_v26, %v667_v27  ;;  %v350_v57 = vsub.f32 %v667_v27, %v665_v26 }
  0x85   :  { %v196_v31 = vrot.slane %v194_v28, 2 }
  0x86   :  { %v183_v33 = vrot.slane %v181_v29, 2  ;;  %v677_v35 = vpop.trf.xlu1  ;;  %537 = vrsqrt.f32 %v675_v34  ;;  %v351_v7 = vmul.f32 %v350_v57, %v350_v57  ;;  %vm367_vm0 = vcmp.eq.f32.partialorder %v675_v34, inf }
  0x87   :  { %v198_v38 = vsub.f32 %v193_v30, %v196_v31  ;;  %v199_v39 = vadd.f32 %v196_v31, %v193_v30  ;;  %v200_v40 = vmul.f32 0.5, %v677_v35  ;;  %v681_v56 = vpop.trf.xlu0  ;;  %vm369_vm1 = vcmp.eq.f32.partialorder %v675_v34, 0.0 }
  0x88   :  { %v185_v36 = vsub.f32 %v180_v32, %v183_v33  ;;  %v186_v37 = vadd.f32 %v183_v33, %v180_v32  ;;  %v187_v2 = vmul.f32 0.5, %v681_v56  ;;  %v353_v29 = vrot.slane %v351_v7, 1 }
  0x89   :  { %v261_v41 = vrot.slane %v199_v39, 5  ;;  %v264_v42 = vrot.slane %v198_v38, 5  ;;  %v202_v43 = vrot.slane %v200_v40, 2  ;;  %v216_v46 = vsub.f32 %v199_v39, %v198_v38 }
  0x8a   :  { %v226_v44 = vmin.f32 %v186_v37, %v199_v39  ;;  %v227_v45 = vmax.f32 %v185_v36, %v198_v38  ;;  %v206_v49 = vsub.f32 %v186_v37, %v185_v36  ;;  %v238_v59 = vrot.slane %v199_v39, 3  ;;  %v162_v21 = vpop.trf.xlu1 }
  0x8b   :  { %v204_v47 = vsub.f32 %v193_v30, %v202_v43  ;;  %v205_v48 = vadd.f32 %v202_v43, %v193_v30  ;;  %v263_v51 = vmin.f32 %v186_v37, %v261_v41  ;;  %v266_v53 = vmax.f32 %v185_v36, %v264_v42  ;;  %v130_v22 = vpop.trf.xlu0 }
  0x8c   :  { %v228_v50 = vsub.f32 %v226_v44, %v227_v45  ;;  %v218_v58 = vrot.slane %v216_v46, 1  ;;  %v208_v60 = vrot.slane %v206_v49, 1  ;;  %v242_v1 = vrot.slane %v198_v38, 3 }
  0x8d   :  { %v221_v52 = vsub.f32 %v205_v48, %v204_v47  ;;  %v270_v54 = vrot.slane %v205_v48, 5  ;;  %v274_v55 = vrot.slane %v204_v47, 5  ;;  %v267_v4 = vsub.f32 %v263_v51, %v266_v53 }
  0x8e   :  { %v229_v0 = vmax.f32 %v228_v50, 0.0  ;;  %v189_v8 = vrot.slane %v187_v2, 2  ;;  %v220_v9 = vmul.f32 %v218_v58, %v216_v46  ;;  %v210_v10 = vmul.f32 %v208_v60, %v206_v49  ;;  %v163_v50 = vpop.trf.xlu1 }
  0x8f   :  { %v223_v61 = vrot.slane %v221_v52, 1  ;;  %v272_v62 = vmin.f32 %v186_v37, %v270_v54  ;;  %v276_v63 = vmax.f32 %v185_v36, %v274_v55  ;;  %v240_v12 = vmin.f32 %v186_v37, %v238_v59  ;;  %v131_v51 = vpop.trf.xlu0 }
  0x90   :  { %v538_v6 = vpop.eup %537  ;;  %v231_v13 = vrot.slane %v229_v0, 1  ;;  %v244_v14 = vmax.f32 %v185_v36, %v242_v1  ;;  %v191_v15 = vsub.f32 %v180_v32, %v189_v8  ;;  %v192_v16 = vadd.f32 %v189_v8, %v180_v32 }
  0x91   :  { %v225_v3 = vmul.f32 %v223_v61, %v216_v46  ;;  %v277_v5 = vsub.f32 %v272_v62, %v276_v63  ;;  %v268_v17 = vmax.f32 %v267_v4, 0.0  ;;  %v366_v20 = vmul.f32 %v538_v6, %v675_v34 }
  0x92   :  { %v211_v23 = vsub.f32 %v192_v16, %v191_v15  ;;  %v247_v24 = vmin.f32 %v192_v16, %v238_v59  ;;  %v248_v25 = vmax.f32 %v191_v15, %v242_v1  ;;  %v289_v28 = vmin.f32 %v192_v16, %v205_v48 }
  0x93   :  { %v278_v11 = vmax.f32 %v277_v5, 0.0  ;;  %v284_v19 = vrot.slane %v225_v3, 5  ;;  %v290_v31 = vmax.f32 %v191_v15, %v204_v47  ;;  %v690_v33 = vmul.f32 %v231_v13, %v229_v0 }
  0x94   :  { %v245_v32 = vsub.f32 %v240_v12, %v244_v14  ;;  %v213_v36 = vrot.slane %v211_v23, 1  ;;  %v249_v37 = vsub.f32 %v247_v24, %v248_v25  ;;  %v234_v38 = vadd.f32 %v220_v9, %v210_v10 }
  0x95   :  { %v280_v18 = vrot.slane %v278_v11, 1  ;;  %v286_v39 = vadd.f32 %v284_v19, %v210_v10  ;;  %v291_v40 = vsub.f32 %v289_v28, %v290_v31  ;;  %v368_v41 = vsel %vm367_vm0, %v675_v34, %v366_v20 }
  0x96   :  { %v215_v42 = vmul.f32 %v213_v36, %v206_v49  ;;  %v250_v43 = vmax.f32 %v249_v37, 0.0  ;;  %v696_v44 = vmul.f32 %v677_v35, %v681_v56  ;;  %v256_v46 = vrot.slane %v220_v9, 3 }
  0x97   :  { %v687_v30 = vmul.f32 %v280_v18, %v268_v17  ;;  %v370_v47 = vand.u32 2147483648, %v675_v34  ;;  %v292_v48 = vmax.f32 %v291_v40, 0.0  ;;  %v235_v52 = vsub.f32 %v234_v38, %v690_v33 }
  0x98   :  { %v246_v53 = vmax.f32 %v245_v32, 0.0  ;;  %v355_v54 = vadd.f32 %v353_v29, %v351_v7  ;;  %v252_v55 = vrot.slane %v250_v43, 1  ;;  %v439_v58 = vsub.f32 %v681_v56, %v677_v35 }
  0x99   :  { %v287_v45 = vsub.f32 %v286_v39, %v687_v30  ;;  %v371_v49 = vsel %vm369_vm1, %v370_v47, %v368_v41  ;;  %v294_v57 = vrot.slane %v292_v48, 1  ;;  %v440_v59 = vsub.f32 %v130_v22, %v162_v21 }
  0x9a   :  { %v705_v60 = vmul.f32 %v252_v55, %v246_v53  ;;  %v258_v61 = vadd.f32 %v256_v46, %v215_v42  ;;  %539 = vrsqrt.f32 %v696_v44  ;;  %v441_v62 = vsub.f32 %v131_v51, %v163_v50 }
  0x9b   :  { %v288_v63 = vadd.f32 1e-12, %v287_v45  ;;  %v708_v1 = vmul.f32 %v294_v57, %v229_v0  ;;  %v297_v2 = vadd.f32 %v225_v3, %v215_v42  ;;  %v443_v4 = vmul.f32 %v440_v59, %v440_v59 }
  0x9c   :  { %v236_v5 = vadd.f32 1e-12, %v235_v52  ;;  %v259_v34 = vsub.f32 %v258_v61, %v705_v60  ;;  %v444_v6 = vmul.f32 %v441_v62, %v441_v62  ;;  %v357_v7 = vrot.slane %v667_v27, 2 }
  0x9d   :  { %v372_v8 = vmul.f32 2.0, %v371_v49  ;;  %v298_v9 = vsub.f32 %v297_v2, %v708_v1  ;;  %v442_v10 = vmul.f32 %v439_v58, %v439_v58  ;;  %v313_v13 = vrot.slane %v288_v63, 3 }
  0x9e   :  { %v260_v11 = vadd.f32 1e-12, %v259_v34  ;;  %v452_v12 = vrot.slane %v444_v6, 2  ;;  %v359_v14 = vadd.f32 %v357_v7, %v355_v54  ;;  %v450_v16 = vrot.slane %v443_v4, 2 }
  0x9f   :  { %v299_v15 = vadd.f32 1e-12, %v298_v9  ;;  %v301_v0 = vrot.slane %v236_v5, 3  ;;  %v361_v3 = vrot.slane %v665_v26, 2  ;;  %v374_v18 = vrot.slane %v372_v8, 2 }
  0xa0   :  { %v305_v17 = vrot.slane %v260_v11, 5  ;;  %v449_v20 = vrot.slane %v442_v10, 2  ;;  %v453_v21 = vsel %vm448_vm2, %v450_v16, %v452_v12  ;;  %v315_v24 = vmul.f32 %v313_v13, %v708_v1 }
  0xa1   :  { %v317_v19 = vrot.slane %v299_v15, 5  ;;  %v363_v23 = vadd.f32 %v361_v3, %v359_v14  ;;  %v303_v31 = vmul.f32 %v301_v0, %v705_v60  ;;  %v459_v36 = vsel %vm457_vm3, %v453_v21, 0.0 }
  0xa2   :  { %v307_v22 = vmul.f32 %v305_v17, %v690_v33  ;;  %v451_v28 = vsel %vm448_vm2, %v449_v20, %v450_v16  ;;  %v377_v39 = vrot.slane %v667_v27, 3  ;;  %v462_v48 = vsel %vm461_vm4, %v452_v12, 0.0 }
  0xa3   :  { %v319_v25 = vmul.f32 %v317_v19, %v687_v30  ;;  %v376_v37 = vsub.f32 %v363_v23, %v374_v18  ;;  %v458_v41 = vsel %vm457_vm3, %v451_v28, 0.0  ;;  %vm397_vm7 = vcmp.eq.f32.partialorder %v696_v44, inf }
  0xa4   :  { %v540_v29 = vpop.eup %539  ;;  %v309_v32 = vrot.slane %v307_v22, 3  ;;  %v460_v45 = vadd.f32 %v459_v36, %v458_v41  ;;  %v380_v51 = vrot.slane %v665_v26, 3  ;;  %v400_v54 = vand.u32 2147483648, %v696_v44 }
  0xa5   :  { %v321_v38 = vrot.slane %v319_v25, 3  ;;  %v396_v46 = vmul.f32 %v540_v29, %v696_v44  ;;  %v379_v50 = vadd.f32 %v377_v39, %v376_v37  ;;  %v387_v55 = vrot.slane %v681_v56, 3 }
  0xa6   :  { %vm719_vm5 = vcmp.gt.f32.partialorder %v303_v31, %v309_v32  ;;  %v463_v52 = vadd.f32 %v462_v48, %v460_v45  ;;  %vm399_vm8 = vcmp.eq.f32.partialorder %v696_v44, 0.0  ;;  %v383_v63 = vrot.slane %v372_v8, 3 }
  0xa7   :  { %vm723_vm6 = vcmp.gt.f32.partialorder %v315_v24, %v321_v38  ;;  %v328_v43 = vsel %vm719_vm5, %v260_v11, %v301_v0  ;;  %v398_v53 = vsel %vm397_vm7, %v696_v44, %v396_v46  ;;  %v382_v49 = vadd.f32 %v380_v51, %v379_v50  ;;  %vm740_vm10 = vmxor %vm719_vm5, %vm569_vm9 }
  0xa8   :  { %541 = vrcp.f32 %v328_v43  ;;  %v335_v47 = vsel %vm723_vm6, %v299_v15, %v313_v13  ;;  %v401_v58 = vsel %vm399_vm8, %v400_v54, %v398_v53  ;;  %v389_v59 = vadd.f32 %v387_v55, %v376_v37  ;;  %vm746_vm11 = vmxor %vm723_vm6, %vm569_vm9 }
  0xa9   :  { %543 = vrcp.f32 %v335_v47  ;;  %v464_v61 = vrot.slane %v463_v52, 4  ;;  %v325_v2 = vrot.slane %v690_v33, 3  ;;  %v391_v44 = vrot.slane %v677_v35, 3  ;;  %vm340_vm12 = vmor %vm740_vm10, %vm746_vm11 }
  0xaa   :  { %v332_v4 = vrot.slane %v687_v30, 3  ;;  %v385_v5 = vsub.f32 %v382_v49, %v383_v63  ;;  %v402_v34 = vmul.f32 2.0, %v401_v58  ;;  %vm343_vm13 = vmor %vm719_vm5, %vm723_vm6  ;;  %v433_v20 = vmul.f32 %v681_v56, %v681_v56 }
  0xab   :  { %v327_v7 = vsel %vm719_vm5, %v705_v60, %v325_v2  ;;  %v393_v33 = vadd.f32 %v391_v44, %v389_v59  ;;  %v465_v30 = vadd.f32 %v464_v61, %v463_v52  ;;  %v432_v38 = vmul.f32 %v667_v27, %v667_v27 }
  0xac   :  { %v334_v35 = vsel %vm723_vm6, %v708_v1, %v332_v4  ;;  %v404_v12 = vrot.slane %v402_v34, 3  ;;  %v427_v13 = vrot.slane %v385_v5, 3  ;;  %v570_v1 = vmov 0.0  }
  0xad   :  { %v530_v15 = vsel %vm340_vm12, 1.0, %v570_v1  ;;  %v531_v16 = vsel %vm343_vm13, 1.0, %v570_v1  ;;  %v466_v17 = vrot.slane %v465_v30, 2  ;;  %v435_v31 = vrot.slane %v433_v20, 5 }
  0xae   :  { %v406_v18 = vsub.f32 %v393_v33, %v404_v12  ;;  %v429_v23 = vmul.f32 %v530_v15, %v427_v13  ;;  %v84_v42 = vlaneseq  ;;  %v529_v46 = vsel %vm177_vm14, 1.0, %v570_v1 }
  0xaf   :  { %v467_v28 = vadd.f32 %v466_v17, %v465_v30  ;;  %vm486_vm1 = vcmask 794624   ;;  %vm82_vm2 = vcmask 0  }
  0xb0   :  { %v430_v24 = vmul.f32 %v531_v16, %v406_v18  ;;  %v85_v51 = vand.u32 127, %v84_v42  ;;  %83 = vst.msk [vmem:[#allocation2] sm:$0x1] %vm82_vm2, %v570_v1 }
  0xb1   :  { %v468_v39 = vrot.slane %v467_v28, 1 }
  0xb2   :  { %v542_v6 = vpop.eup %541  ;;  %v431_v37 = vadd.f32 %v430_v24, %v429_v23  ;;  %vm481_vm0 = vcmp.lt.s32.totalorder %v85_v51, 98 }
  0xb3   :  { %v544_v9 = vpop.eup %543  ;;  %v330_v8 = vmul.f32 %v542_v6, %v327_v7  ;;  %v469_v47 = vadd.f32 %v468_v39, %v467_v28 }
  0xb4   :  { %v337_v10 = vmul.f32 %v544_v9, %v334_v35  ;;  %v470_v45 = vmul.f32 5.0, %v431_v37 }
  0xb5   :  { %v348_v60 = vsel %vm719_vm5, %v330_v8, 0.0  ;;  %v346_v11 = vsel %vm740_vm10, %v330_v8, 0.0 }
  0xb6   :  { %v349_v14 = vsel %vm723_vm6, %v337_v10, %v348_v60  ;;  %v347_v0 = vsel %vm746_vm11, %v337_v10, %v346_v11 }
  0xb7   :  { %v417_v3 = vrot.slane %v349_v14, 4  ;;  %v408_v19 = vrot.slane %v347_v0, 1  ;;  %v497_v26 = vld [vmem:[#allocation2] sm:$0x1] }
  0xb9   :  { %v419_v21 = vsub.f32 %v681_v56, %v417_v3  ;;  %v410_v22 = vsub.f32 %v667_v27, %v408_v19  ;;  %v437_v56 = vadd.f32 %v435_v31, %v432_v38 }
  0xbb   :  { %v420_v25 = vmul.f32 %v419_v21, %v419_v21  ;;  %v411_v29 = vmul.f32 %v410_v22, %v410_v22  ;;  %v438_v50 = vmul.f32 %v529_v46, %v437_v56 }
  0xbd   :  { %v422_v32 = vrot.slane %v420_v25, 4  ;;  %v413_v36 = vrot.slane %v411_v29, 7  ;;  %v477_v54 = vmul.f32 0.5, %v438_v50 }
  0xbf   :  { %v415_v40 = vmul.f32 %v530_v15, %v413_v36  ;;  %v424_v41 = vmul.f32 %v531_v16, %v422_v32 }
  0xc1   :  { %v425_v43 = vadd.f32 %v424_v41, %v415_v40 }
  0xc3   :  { %v471_v48 = vadd.f32 %v470_v45, %v425_v43 }
  0xc5   :  { %v472_v52 = vadd.f32 %v471_v48, %v469_v47 }
  0xc7   :  { %v474_v53 = vrot.slane %v472_v52, 1 }
  0xc9   :  { %v476_v27 = vsel %vm176_vm15, %v474_v53, 0.0 }
  0xca   :  { %v478_v55 = vadd.f32 %v477_v54, %v476_v27 }
  0xcc   :  { %v482_v49 = vsel %vm481_vm0, %v478_v55, 0.0 }
  0xcd   :  { %v484_v57 = vrot.slane %v482_v49, 4 }
  0xcf   :  { %v487_v58 = vsel %vm486_vm1, %v484_v57, 0.0 }
  0xd0   :  { %488 = vadd.xlane.f32.xlu0 %v487_v58 }
 0x15d   :  { %v489_v59 = vpop.xlane.xlu0 %488 }
 0x15e   :  { %v490_v61 = vrot.slane %v489_v59, 4 }
 0x160   :  { %v491_v62 = vadd.f32 %v490_v61, %v489_v59 }
 0x162   :  { %v492_v63 = vrot.slane %v491_v62, 2 }
 0x164   :  { %v493_v2 = vadd.f32 %v492_v63, %v491_v62 }
 0x166   :  { %v494_v44 = vrot.slane %v493_v2, 1 }
 0x168   :  { %v495_v4 = vadd.f32 %v494_v44, %v493_v2 }
 0x16a   :  { %532 = vpush %v495_v4 }
 0x19b   :  { %s533_s0 = spop %532 }
 0x19c   :  { %s498_s1 = smul.f32 0.5, %s533_s0 }
 0x19e   :  { %v499_v5 = vstv %s498_s1 }
 0x19f   :  { %v500_v34 = vadd.f32 %v499_v5, %v497_v26 }
 0x1a1   :  { %502 = vst.msk [vmem:[#allocation2] sm:$0x1] %vm82_vm2, %v500_v34 }
 0x1a2   :  { %556 = shalt.err (!%p553_p4)
}
 0x1a3   :  { %s557_s11 = scalar_lea.hbm %s799_s2, 16 }
 0x1a4   :  { %p558_p5 = scmp.ne.s32.totalorder %s799_s2, %s557_s11  ;;  %p561_p6 = scmp.lt.u32.totalorder %s557_s11, %s799_s2 }
 0x1a6   :  { %p563_p7 = pnand %p561_p6, %p558_p5 }
 0x1a8   :  { %566 = shalt.err (!%p563_p7)
}
 0x1a9   :  { %512 = dma.vmem_to_hbm [thread:$0]  %s510_s6, 16, %s799_s2, [#allocation3]  }
 0x1aa   :  { %567 = dma.done.wait [#allocation3], 16  }
 0x1ab   :  { %568 = vsyncadd [#allocation3], 4294967280 }
 0x1ac   :  { %516 = vsyncpa [#allocation3], 1 }

</bundles_post_ra>
